<compile_context>
chip_gen: v5e
topology: v5e:2x2
jax: 0.10.0
libtpu: 0.0.40
codegen_flags: <defaults>
</compile_context>

<pallas_src>
import jax
import jax.numpy as jnp
from jax.experimental import pallas as pl
from jax.experimental.pallas import tpu as pltpu


_LANES = 128


def _variance_head_kernel(x_ref, w_ref, b_ref, o_ref):
    # x_ref: (TM, H)    hidden-state row tile (native dtype)
    # w_ref: (H, 128)   zero-padded weight (only column 0 nonzero), resident
    # b_ref: (1,)       linear bias, SMEM f32 scalar
    # o_ref: (TM, 1)    softplus(x @ w + b)
    #
    # MXU contraction with f32 accumulation.  Columns 1..127 of the result
    # multiply the zero padding and are discarded; the MXU is far from its
    # roofline here so the wasted lanes are free and the kernel stays
    # HBM-bandwidth bound.
    zc = jnp.dot(x_ref[...], w_ref[...], preferred_element_type=jnp.float32)
    z = zc[:, 0:1] + b_ref[0]                                  # (TM, 1) f32
    # PyTorch nn.Softplus(beta=1, threshold=20): linear for z > 20,
    # log1p(exp(z)) otherwise (clamp before exp for overflow safety).
    z_safe = jnp.minimum(z, 20.0)
    sp = jnp.log1p(jnp.exp(z_safe))
    o_ref[...] = jnp.where(z > 20.0, z, sp).astype(o_ref.dtype)


def _pick_tile_rows(m, h, itemsize):
    """Row-tile size: ~12 MiB/input buffer, multiple of 128, >=4 grid steps."""
    target_bytes = 12 * 1024 * 1024
    tm = target_bytes // max(1, h * itemsize)
    # Bound the (TM, 128) f32 MXU result and the 128-lane-padded output buffer.
    tm = min(tm, 8192)
    # Guarantee >= 4 grid steps for moderate M (pipelining + v7x megacore).
    if m > 512:
        tm = min(tm, pl.cdiv(m, 4))
    tm = max(128, (tm // 128) * 128)
    if tm >= m:
        return m                # single full-extent block (tiny inputs only)
    return tm


def variance_head_forward(hidden_states, weight, bias):
    """hidden_states: [B, S, H]; weight: [1, H]; bias: [1] -> [B, S, 1]."""
    B, S, H = hidden_states.shape
    M = B * S

    x2d = hidden_states.reshape(M, H)                 # native dtype, no upcast
    x_itemsize = jnp.dtype(x2d.dtype).itemsize

    # Lane-dense MXU operand: (H, 128) with only column 0 nonzero, matching
    # the activations' dtype so the MXU sees same-dtype operands (f32 accum).
    w_col = weight.reshape(H, 1).astype(x2d.dtype)
    w_pad = jnp.pad(w_col, ((0, 0), (0, _LANES - 1)))
    w_itemsize = jnp.dtype(w_pad.dtype).itemsize

    b1 = bias.reshape(1).astype(jnp.float32)          # SMEM scalar
    out_dtype = weight.dtype                          # mirrors module's dtype cast

    tm = _pick_tile_rows(M, H, x_itemsize)
    grid = (pl.cdiv(M, tm),)

    out = pl.pallas_call(
        _variance_head_kernel,
        out_shape=jax.ShapeDtypeStruct((M, 1), out_dtype),
        grid_spec=pl.GridSpec(
            grid=grid,
            in_specs=[
                pl.BlockSpec((tm, H), lambda i: (i, 0)),            # row tile
                pl.BlockSpec((H, _LANES), lambda i: (0, 0)),        # weight (resident)
                pl.BlockSpec(memory_space=pltpu.MemorySpace.SMEM),  # bias scalar
            ],
            out_specs=pl.BlockSpec((tm, 1), lambda i: (i, 0)),
        ),
        compiler_params=pltpu.CompilerParams(
            dimension_semantics=("parallel",),        # megacore split on v7x
            vmem_limit_bytes=48 * 1024 * 1024,        # safe on v5e/v6e/v7x
        ),
        cost_estimate=pl.CostEstimate(
            flops=2 * M * H,
            transcendentals=2 * M,
            bytes_accessed=M * H * x_itemsize
            + H * _LANES * w_itemsize
            + M * jnp.dtype(out_dtype).itemsize,
        ),
    )(x2d, w_pad, b1)

    return out.reshape(B, S, 1)


def reference_forward(hidden_states, weight, bias):
    z = jnp.einsum(
        "bsh,oh->bso",
        hidden_states.astype(jnp.float32),
        weight.astype(jnp.float32),
    ) + bias.astype(jnp.float32)
    return jnp.where(z > 20.0, z, jnp.log1p(jnp.exp(jnp.minimum(z, 20.0))))


if __name__ == "__main__":
    # Small shapes consistent with the module: batch=2, seq=8, hidden=32.
    B, S, H = 2, 8, 32
    key = jax.random.PRNGKey(0)
    k_x, k_w, k_b = jax.random.split(key, 3)

    hidden_states = jax.random.normal(k_x, (B, S, H), dtype=jnp.float32)

    # Deterministic nn.Linear(H, 1)-style init: U(-1/sqrt(H), 1/sqrt(H)).
    bound = 1.0 / jnp.sqrt(jnp.array(H, dtype=jnp.float32))
    weight = jax.random.uniform(k_w, (1, H), minval=-bound, maxval=bound,
                                dtype=jnp.float32)
    bias = jax.random.uniform(k_b, (1,), minval=-bound, maxval=bound,
                              dtype=jnp.float32)

    var = variance_head_forward(hidden_states, weight, bias)
    var = jax.block_until_ready(var)

    ref = reference_forward(hidden_states, weight, bias)
    assert var.shape == (B, S, 1), var.shape
    assert jnp.allclose(var.astype(jnp.float32), ref, atol=1e-5, rtol=1e-5), \
        "mismatch vs reference"

    print("KERNEL_OK")
</pallas_src>

<mosaic_0001>
module attributes {stable_mosaic.version = 11 : i64} {
  func.func @_variance_head_kernel(%arg0: i32, %arg1: memref<16x32xf32, #tpu.memory_space<vmem>>, %arg2: memref<32x128xf32, #tpu.memory_space<vmem>>, %arg3: memref<1xf32, #tpu.memory_space<smem>>, %arg4: memref<16x1xf32, #tpu.memory_space<vmem>>) attributes {dimension_semantics = [#tpu.dimension_semantics<parallel>], iteration_bounds = array<i64: 1>, scalar_prefetch = 0 : i64, scratch_operands = 0 : i64, tpu.core_type = #tpu.core_type<tc>, window_params = [{transform_indices = @transform_0, window_bounds = array<i64: 16, 32>}, {pipeline_mode = #tpu.pipeline_mode<synchronous>, transform_indices = @transform_1, window_bounds = array<i64: 32, 128>}, {transform_indices = @transform_2, window_bounds = array<i64: 1>}, {transform_indices = @transform_3, window_bounds = array<i64: 16, 1>}]} {
    %c0 = arith.constant 0 : index
    %c0_0 = arith.constant 0 : index
    %0 = vector.load %arg1[%c0, %c0_0] : memref<16x32xf32, #tpu.memory_space<vmem>>, vector<16x32xf32>
    %c0_1 = arith.constant 0 : index
    %c0_2 = arith.constant 0 : index
    %1 = vector.load %arg2[%c0_1, %c0_2] : memref<32x128xf32, #tpu.memory_space<vmem>>, vector<32x128xf32>
    %cst = arith.constant dense<0.000000e+00> : vector<16x128xf32>
    %2 = tpu.matmul %0, %1, %cst {dimension_numbers = #tpu.dot_dimension_numbers<[1], [0], [0], [1], [0, 0, 1, 1], [], []>} : vector<16x32xf32>, vector<32x128xf32>, vector<16x128xf32> -> vector<16x128xf32>
    %3 = vector.extract_strided_slice %2 {offsets = [0, 0], sizes = [16, 1], strides = [1, 1]} : vector<16x128xf32> to vector<16x1xf32>
    %c0_3 = arith.constant 0 : index
    %4 = memref.load %arg3[%c0_3] : memref<1xf32, #tpu.memory_space<smem>>
    %5 = vector.broadcast %4 : f32 to vector<16x1xf32>
    %6 = arith.addf %3, %5 : vector<16x1xf32>
    %cst_4 = arith.constant 2.000000e+01 : f32
    %7 = vector.broadcast %cst_4 : f32 to vector<16x1xf32>
    %8 = arith.minimumf %6, %7 : vector<16x1xf32>
    %9 = math.exp %8 : vector<16x1xf32>
    %10 = math.log1p %9 : vector<16x1xf32>
    %cst_5 = arith.constant 2.000000e+01 : f32
    %11 = vector.broadcast %cst_5 : f32 to vector<16x1xf32>
    %12 = arith.cmpf ogt, %6, %11 : vector<16x1xf32>
    %13 = arith.select %12, %6, %10 : vector<16x1xi1>, vector<16x1xf32>
    %c0_6 = arith.constant 0 : index
    %c0_7 = arith.constant 0 : index
    %14 = vector.load %arg4[%c0_6, %c0_7] : memref<16x1xf32, #tpu.memory_space<vmem>>, vector<16x1xf32>
    tpu.vector_store %arg4[%c0_6, %c0_7], %13 {strides = array<i32>} : memref<16x1xf32, #tpu.memory_space<vmem>>, vector<16x1xf32>,
    return
  }
  func.func @transform_0(%arg0: i32) -> (i32, i32) {
    %c0_i32 = arith.constant 0 : i32
    %c0_i32_0 = arith.constant 0 : i32
    return %arg0, %c0_i32 : i32, i32
  }
  func.func @transform_1(%arg0: i32) -> (i32, i32) {
    %c0_i32 = arith.constant 0 : i32
    %c0_i32_0 = arith.constant 0 : i32
    %c0_i32_1 = arith.constant 0 : i32
    return %c0_i32, %c0_i32_0 : i32, i32
  }
  func.func @transform_2(%arg0: i32) -> i32 {
    %c0_i32 = arith.constant 0 : i32
    %c0_i32_0 = arith.constant 0 : i32
    return %c0_i32 : i32
  }
  func.func @transform_3(%arg0: i32) -> (i32, i32) {
    %c0_i32 = arith.constant 0 : i32
    %c0_i32_0 = arith.constant 0 : i32
    return %arg0, %c0_i32 : i32, i32
  }
}

</mosaic_0001>

<bundles_post_ra>
// kernel: tpu_custom_call.1
= control target key start
LH: loop header
LB: loop body
LE: loop exit
PB: predicated region body
PF: predicated region fallthrough
CT: control target
= control target key end

     0   :  { %9 = vsyncpa [#allocation4], 0  ;;  %s233_s0 = inlined_call_operand.hbm [shape: f32[16,32], index: 0, kind: input, shape index: {}]   ;;  %s234_s1 = inlined_call_operand.hbm [shape: f32[32,128], index: 1, kind: input, shape index: {}]   ;;  %s235_s2 = inlined_call_operand.<no memory space> [shape: f32[1], index: 2, kind: input, shape index: {}]   ;;  %s236_s3 = inlined_call_operand.vmem [shape: f32[16,1], index: 3, kind: output, shape index: {}]  }
   0x1   :  { %s15_s14 = sshll.u32 %s233_s0, 4  ;;  %s16_s14 = int_to_ptr.hbm [resolvable:$true] %s15_s14 }
   0x2   :  { %10 = vsyncpa [#allocation6], 0  ;;  %s194_s15 = smov [#allocation3]   ;;  %s28_s19 = sshll.u32 %s234_s1, 4  ;;  %s29_s19 = int_to_ptr.hbm [resolvable:$true] %s28_s19 }
   0x3   :  { %s17_s16 = sshll.u32 %s194_s15, 4  ;;  %s195_s20 = smov 128   ;;  %s18_s16 = int_to_ptr.vmem [resolvable:$true] %s17_s16 }
   0x4   :  { %s196_s21 = smov 8   ;;  %s197_s22 = smov [#allocation5]  }
   0x5   :  { %23 = dma.hbm_to_vmem [thread:$0]  %s16_s14, 256, %s18_s16, [#allocation4], %s195_s20, %s195_s20, %s196_s21  }
   0x6   :  { %s30_s23 = sshll.u32 %s197_s22, 4  ;;  %s31_s23 = int_to_ptr.vmem [resolvable:$true] %s30_s23 }
   0x7   :  { %36 = dma.hbm_to_vmem [thread:$0]  %s29_s19, 512, %s31_s23, [#allocation6], %s195_s20, %s195_s20, %s196_s21  }
   0x8   :  { %190 = dma.done.wait [#allocation4], 256  }
   0x9   :  { %191 = vsyncadd [#allocation4], 4294967040 }
   0xa   :  { %192 = dma.done.wait [#allocation6], 512  }
   0xb   :  { %193 = vsyncadd [#allocation6], 4294966784  ;;  %v52_v0 = vld [vmem:[#allocation5 + $0x18] sm:$0xff]  ;;  %v51_v1 = vld [vmem:[#allocation5 + $0x10] sm:$0xff]  ;;  %vm53_vm0 = vcmask 261120   ;;  %v84_v6 = vstv %s235_s2  ;;  %vm115_vm2 = vcmask 7168  }
   0xc   :  { %72 = vmatpush.msra.mxu0 %v52_v0  ;;  %126 = vmatpush.msra.mxu1 %v52_v0  ;;  %v50_v2 = vld [vmem:[#allocation5 + $0x8] sm:$0xff]  ;;  %v49_v3 = vld [vmem:[#allocation5] sm:$0xff]  ;;  %v47_v4 = vld [vmem:[#allocation3] sm:$0xff] }
   0xd   :  { %v48_v5 = vld [vmem:[#allocation3 + $0x8] sm:$0xff] }
   0xe   :  { %73 = vmatpush.msra.mxu0 %v51_v1  ;;  %127 = vmatpush.msra.mxu1 %v51_v1 }
  0x10   :  { %74 = vmatpush.msra.mxu0 %v50_v2  ;;  %128 = vmatpush.msra.mxu1 %v50_v2 }
  0x12   :  { %75 = vmatpush.msra.mxu0 %v49_v3  ;;  %129 = vmatpush.msra.mxu1 %v49_v3 }
  0x13   :  { %124 = vmatmul.msk.f32.vlgmr.msra.gmra.mxu0 %vm53_vm0, %v47_v4  ;;  %125 = vmatmul.msk.f32.vlgmr.msra.gmra.mxu1 %vm53_vm0, %v48_v5 }
  0x90   :  { %v77_v7 = vpop.f32.mrf.mxu0  ;;  %v80_v8 = vpop.f32.mrf.mxu1 }
  0x91   :  { %v85_v9 = vadd.f32 %v84_v6, %v77_v7  ;;  %v86_v10 = vadd.f32 %v84_v6, %v80_v8 }
  0x93   :  { %v87_v11 = vmin.f32 %v85_v9, 20.0  ;;  %v88_v12 = vmin.f32 %v86_v10, 20.0  ;;  %vm111_vm3 = vcmp.gt.f32.partialorder %v85_v9, 20.0  ;;  %vm112_vm5 = vcmp.gt.f32.partialorder %v86_v10, 20.0 }
  0x95   :  { %v89_v13 = vmul.f32 1.442695, %v87_v11  ;;  %v91_v14 = vmul.f32 1.442695, %v88_v12 }
  0x97   :  { %134 = vpow2.f32 %v89_v13 }
  0x98   :  { %136 = vpow2.f32 %v91_v14 }
  0x9d   :  { %v135_v15 = vpop.eup %134 }
  0x9e   :  { %v137_v16 = vpop.eup %136  ;;  %v93_v17 = vadd.f32 1.0, %v135_v15  ;;  %v96_v18 = vmul.f32 -0.5, %v135_v15  ;;  %v99_v22 = vand.u32 2147483647, %v135_v15 }
  0x9f   :  { %v102_v19 = vadd.f32 1.0, %v137_v16  ;;  %v105_v20 = vmul.f32 -0.5, %v137_v16  ;;  %v108_v24 = vand.u32 2147483647, %v137_v16 }
  0xa0   :  { %138 = vlog2.f32 %v93_v17  ;;  %v97_v21 = vadd.f32 1.0, %v96_v18  ;;  %vm100_vm1 = vcmp.lt.f32.partialorder %v99_v22, 0.0004427343 }
  0xa1   :  { %140 = vlog2.f32 %v102_v19  ;;  %v106_v23 = vadd.f32 1.0, %v105_v20  ;;  %vm109_vm4 = vcmp.lt.f32.partialorder %v108_v24, 0.0004427343 }
  0xa2   :  { %v98_v28 = vmul.f32 %v135_v15, %v97_v21 }
  0xa3   :  { %v107_v30 = vmul.f32 %v137_v16, %v106_v23 }
  0xa6   :  { %v139_v25 = vpop.eup %138 }
  0xa7   :  { %v141_v26 = vpop.eup %140  ;;  %v95_v27 = vmul.f32 0.6931472, %v139_v25 }
  0xa8   :  { %v104_v29 = vmul.f32 0.6931472, %v141_v26 }
  0xa9   :  { %v101_v31 = vsel %vm100_vm1, %v98_v28, %v95_v27 }
  0xaa   :  { %v113_v32 = vsel %vm111_vm3, %v85_v9, %v101_v31  ;;  %v110_v33 = vsel %vm109_vm4, %v107_v30, %v104_v29 }
  0xab   :  { %116 = vst.msk [vmem:[%s236_s3] sm:$0xff] %vm115_vm2, %v113_v32  ;;  %v114_v34 = vsel %vm112_vm5, %v86_v10, %v110_v33 }
  0xac   :  { %117 = vst.msk [vmem:[%s236_s3 + $0x8] sm:$0xff] %vm115_vm2, %v114_v34 }
  0xad   :  { %122 = vsyncpa [#allocation4], 1 }
  0xae   :  { %123 = vsyncpa [#allocation6], 1 }

</bundles_post_ra>
